<compile_context>
chip_gen: v5e
topology: v5e:2x2
jax: 0.10.0
libtpu: 0.0.40
codegen_flags: <defaults>
</compile_context>

<pallas_src>
import functools
import inspect
import math

import jax
import jax.numpy as jnp
from jax.experimental import pallas as pl
from jax.experimental.pallas import tpu as pltpu


# ----------------------------- kernels --------------------------------------


def _silu(h):
    # x * sigmoid(x) = x / (1 + exp(-x)).  exp and the approximate reciprocal
    # both issue on the EUP slot, so this is free filler when MXU-bound and
    # avoids extra VALU select work when EUP-bound.
    return h * pl.reciprocal(1.0 + jnp.exp(-h), approx=True)


def _make_resident_kernel(precision):
    """Weights fully resident in VMEM: one row-tile per grid step."""

    def kernel(x_ref, w1_ref, b1_ref, w2_ref, b2_ref, o_ref):
        w1 = w1_ref[...]                                    # (E, H)
        w2 = w2_ref[...]                                    # (H, E)
        x = x_ref[...].astype(w1.dtype)                     # (TM, E)
        h = jnp.dot(x, w1, preferred_element_type=jnp.float32,
                    precision=precision)                    # (TM, H) f32
        h = _silu(h + b1_ref[...])
        y = jnp.dot(h.astype(w2.dtype), w2,
                    preferred_element_type=jnp.float32, precision=precision)
        o_ref[...] = _silu(y + b2_ref[...]).astype(o_ref.dtype)

    return kernel


def _make_streaming_kernel(precision):
    """Hidden (3E) dim streamed along a second 'arbitrary' grid axis."""

    def kernel(x_ref, w1_ref, b1_ref, w2_ref, b2_ref, o_ref, acc_ref):
        j = pl.program_id(1)

        @pl.when(j == 0)
        def _():
            acc_ref[...] = jnp.zeros_like(acc_ref)

        w1 = w1_ref[...]                                    # (E, TH)
        w2 = w2_ref[...]                                    # (TH, E)
        x = x_ref[...].astype(w1.dtype)                     # (TM, E)
        h = jnp.dot(x, w1, preferred_element_type=jnp.float32,
                    precision=precision)                    # (TM, TH) f32
        h = _silu(h + b1_ref[...])
        acc_ref[...] += jnp.dot(h.astype(w2.dtype), w2,
                                preferred_element_type=jnp.float32,
                                precision=precision)

        @pl.when(j == pl.num_programs(1) - 1)
        def _():
            o_ref[...] = _silu(acc_ref[...] + b2_ref[...]).astype(o_ref.dtype)

    return kernel


# ----------------------------- helpers ---------------------------------------


def _round_up(x, m):
    return (x + m - 1) // m * m


def _vmem_cap_bytes():
    """Per-generation VMEM limit: physical capacity minus compiler headroom."""
    cap = 64 * 1024 * 1024  # conservative default (v7x-sized)
    try:
        info = pltpu.get_tpu_info()
        cap = int(getattr(info, "vmem_capacity_bytes", cap))
    except Exception:
        pass
    # ~16 MiB headroom on 128 MiB parts (v5e/v6e -> ~112 MiB usable),
    # ~8 MiB on the 64 MiB v7x part (-> ~56 MiB usable).
    return cap - max(8 * 1024 * 1024, cap // 8)


@functools.cache
def _single_buffer_weights_supported():
    """Feature-detect pipeline_mode=pl.Buffered(1) once with a tiny compile."""
    if not hasattr(pl, "Buffered"):
        return False
    try:
        if "pipeline_mode" not in inspect.signature(pl.BlockSpec).parameters:
            return False

        def k(a_ref, b_ref, o_ref):
            o_ref[...] = a_ref[...] + b_ref[...]

        fn = pl.pallas_call(
            k,
            out_shape=jax.ShapeDtypeStruct((16, 128), jnp.float32),
            grid=(2,),
            in_specs=[
                pl.BlockSpec((8, 128), lambda i: (i, 0)),
                pl.BlockSpec((8, 128), lambda i: (0, 0),
                             pipeline_mode=pl.Buffered(1)),
            ],
            out_specs=pl.BlockSpec((8, 128), lambda i: (i, 0)),
        )
        jax.jit(fn).lower(
            jax.ShapeDtypeStruct((16, 128), jnp.float32),
            jax.ShapeDtypeStruct((8, 128), jnp.float32),
        ).compile()
        return True
    except Exception:
        return False


def _choose_row_tile(m_rows, per_row_bytes, avail_bytes, *, max_tile=1024):
    """Largest row tile (multiple of 8, <= max_tile) whose footprint fits."""
    tm = (avail_bytes // max(per_row_bytes, 1)) // 8 * 8
    tm = max(8, min(max_tile, tm))
    tm = min(tm, _round_up(m_rows, 8))
    # Megacore (v7x: 2 TCs): only force >=2 grid steps when there is enough
    # work for the split to pay for the ~600-cycle per-step overhead.
    if m_rows >= 256 and -(-m_rows // tm) < 2:
        tm = max(8, _round_up((m_rows + 1) // 2, 8))
    return tm


# ----------------------------- wrapper ---------------------------------------


def mlp_forward(x, w1, b1, w2, b2, *, matmul_dtype=jnp.bfloat16,
                force_streaming=False, hidden_tile=None):
    """Fused Pallas MLP: out = silu(silu(x @ w1 + b1) @ w2 + b2).

    x: (..., E); w1: (E, 3E); b1: (3E,); w2: (3E, E); b2: (E,).
    """
    *lead, E = x.shape
    H = w1.shape[1]
    assert w1.shape == (E, H) and w2.shape == (H, E)
    assert b1.shape[-1] == H and b2.shape[-1] == E

    xf = x.reshape(-1, E)
    M = xf.shape[0]
    out_dtype = x.dtype

    # MXU operand dtype: bf16 by default.  For f32 operands request HIGHEST
    # precision so the f32 path is a true-precision path, not just a slow one.
    precision = (jax.lax.Precision.HIGHEST
                 if jnp.dtype(matmul_dtype) == jnp.dtype(jnp.float32) else None)
    w1c = w1.astype(matmul_dtype)
    w2c = w2.astype(matmul_dtype)
    b1r = b1.reshape(1, H).astype(jnp.float32)
    b2r = b2.reshape(1, E).astype(jnp.float32)

    wbytes = jnp.dtype(matmul_dtype).itemsize
    xbytes = jnp.dtype(x.dtype).itemsize
    obytes = jnp.dtype(out_dtype).itemsize

    vmem_budget = _vmem_cap_bytes()
    single_buf_w = _single_buffer_weights_supported()
    n_wbuf = 1 if single_buf_w else 2

    # Per-row VMEM footprint: double-buffered x/out tiles + f32 intermediates.
    per_row = (2 * E * xbytes + 2 * E * obytes       # pipelined x / out tiles
               + H * 4 + H * wbytes                  # (tm, H) hidden + cast copy
               + 2 * E * 4)                          # (tm, E) f32 temporaries
    weights_resident = n_wbuf * ((E * H + H * E) * wbytes + (H + E) * 4)

    use_streaming = force_streaming or (
        weights_resident + 128 * per_row > vmem_budget)
    if use_streaming and not force_streaming and H % 128 != 0:
        # TODO(synk): pad H to a multiple of 128 so the streaming path can tile
        # it; fall back to resident weights for now.
        use_streaming = False

    comp = pltpu.CompilerParams(
        dimension_semantics=(("parallel", "arbitrary") if use_streaming
                             else ("parallel",)),
        vmem_limit_bytes=int(vmem_budget),
    )

    if not use_streaming:
        avail = vmem_budget * 2 // 3 - weights_resident
        tm = _choose_row_tile(M, per_row, max(avail, 8 * per_row))
        grid = (pl.cdiv(M, tm),)

        def wspec(shape):
            if single_buf_w:
                # Grid-invariant operands: double-buffering is pure VMEM waste.
                return pl.BlockSpec(shape, lambda i: (0, 0),
                                    pipeline_mode=pl.Buffered(1))
            return pl.BlockSpec(shape, lambda i: (0, 0))

        out = pl.pallas_call(
            _make_resident_kernel(precision),
            out_shape=jax.ShapeDtypeStruct((M, E), out_dtype),
            grid=grid,
            in_specs=[
                pl.BlockSpec((tm, E), lambda i: (i, 0)),    # x row tile
                wspec((E, H)),                               # W1
                wspec((1, H)),                               # b1
                wspec((H, E)),                               # W2
                wspec((1, E)),                               # b2
            ],
            out_specs=pl.BlockSpec((tm, E), lambda i: (i, 0)),
            compiler_params=comp,
        )(xf, w1c, b1r, w2c, b2r)
    else:
        # Stream the 3E hidden dim: W1 columns / W2 rows tiled along the last
        # ("arbitrary") grid axis; (tm, E) f32 partial product in VMEM scratch.
        if hidden_tile is not None:
            th = int(hidden_tile)
        else:
            th = next((t for t in (512, 384, 256, 128) if H % t == 0), H)
        assert H % th == 0, (H, th)

        per_row_s = (2 * E * xbytes + 2 * E * obytes
                     + th * 4 + th * wbytes            # (tm, th) hidden + cast
                     + E * 4                           # (tm, E) f32 partial
                     + E * 4)                          # (tm, E) accumulator
        weight_tiles = 2 * ((E * th + th * E) * wbytes + (th + E) * 4)
        avail = vmem_budget * 2 // 3 - weight_tiles
        tm = _choose_row_tile(M, per_row_s, max(avail, 8 * per_row_s))
        grid = (pl.cdiv(M, tm), H // th)

        out = pl.pallas_call(
            _make_streaming_kernel(precision),
            out_shape=jax.ShapeDtypeStruct((M, E), out_dtype),
            grid=grid,
            in_specs=[
                pl.BlockSpec((tm, E), lambda i, j: (i, 0)),  # x row tile
                pl.BlockSpec((E, th), lambda i, j: (0, j)),  # W1 column tile
                pl.BlockSpec((1, th), lambda i, j: (0, j)),  # b1 tile
                pl.BlockSpec((th, E), lambda i, j: (j, 0)),  # W2 row tile
                pl.BlockSpec((1, E), lambda i, j: (0, 0)),   # b2
            ],
            out_specs=pl.BlockSpec((tm, E), lambda i, j: (i, 0)),
            scratch_shapes=[pltpu.VMEM((tm, E), jnp.float32)],
            compiler_params=comp,
        )(xf, w1c, b1r, w2c, b2r)

    return out.reshape(*lead, E)


# ----------------------------- reference -------------------------------------


def ref_mlp(x, w1, b1, w2, b2):
    h = jax.nn.silu(x @ w1 + b1)
    return jax.nn.silu(h @ w2 + b2)


# ----------------------------- main ------------------------------------------

if __name__ == "__main__":
    B, T, E = 2, 8, 32          # MLP(embedding_dimension=32), input (2, 8, 32)
    H = 3 * E

    key = jax.random.PRNGKey(0)
    kx, k1, k2, k3, k4 = jax.random.split(key, 5)
    x = jax.random.normal(kx, (B, T, E), dtype=jnp.float32)

    def init(k, shape, fan_in):
        bound = 1.0 / math.sqrt(fan_in)
        return jax.random.uniform(k, shape, jnp.float32, -bound, bound)

    # nn.Linear weights stored transposed for right-multiplication.
    w1 = init(k1, (E, H), E)     # linear_1.weight^T
    b1 = init(k2, (H,), E)       # linear_1.bias
    w2 = init(k3, (H, E), H)     # linear_2.weight^T
    b2 = init(k4, (E,), H)       # linear_2.bias

    ref = ref_mlp(x, w1, b1, w2, b2)

    # Default path: bf16 MXU operands, f32 accumulation + f32 bias/SiLU.
    out = jax.block_until_ready(mlp_forward(x, w1, b1, w2, b2))
    assert out.shape == (B, T, E), out.shape
    assert jnp.allclose(out, ref, atol=5e-2, rtol=5e-2), (
        float(jnp.max(jnp.abs(out - ref))))

    # f32 MXU-operand path (precision=HIGHEST).
    out_f32 = jax.block_until_ready(
        mlp_forward(x, w1, b1, w2, b2, matmul_dtype=jnp.float32))
    assert out_f32.shape == (B, T, E), out_f32.shape
    assert jnp.allclose(out_f32, ref, atol=2e-3, rtol=2e-3), (
        float(jnp.max(jnp.abs(out_f32 - ref))))

    # Hidden-dim streaming path (what runs at large E on v7x), exercised here
    # at a small width by forcing it: E=128 -> H=384, three 128-wide tiles.
    E2, H2 = 128, 3 * 128
    kx2, k5, k6, k7, k8 = jax.random.split(jax.random.PRNGKey(0), 5)
    x2 = jax.random.normal(kx2, (B, T, E2), dtype=jnp.float32)
    w1b = init(k5, (E2, H2), E2)
    b1b = init(k6, (H2,), E2)
    w2b = init(k7, (H2, E2), H2)
    b2b = init(k8, (E2,), H2)
    ref2 = ref_mlp(x2, w1b, b1b, w2b, b2b)
    out2 = jax.block_until_ready(
        mlp_forward(x2, w1b, b1b, w2b, b2b,
                    force_streaming=True, hidden_tile=128))
    assert out2.shape == (B, T, E2), out2.shape
    assert jnp.allclose(out2, ref2, atol=5e-2, rtol=5e-2), (
        float(jnp.max(jnp.abs(out2 - ref2))))

    print("KERNEL_OK")
</pallas_src>

<mosaic_0001>
module attributes {stable_mosaic.version = 11 : i64} {
  func.func @kernel(%arg0: i32, %arg1: memref<16x32xf32, #tpu.memory_space<vmem>>, %arg2: memref<32x96xbf16, #tpu.memory_space<vmem>>, %arg3: memref<1x96xf32, #tpu.memory_space<vmem>>, %arg4: memref<96x32xbf16, #tpu.memory_space<vmem>>, %arg5: memref<1x32xf32, #tpu.memory_space<vmem>>, %arg6: memref<16x32xf32, #tpu.memory_space<vmem>>) attributes {dimension_semantics = [#tpu.dimension_semantics<parallel>], iteration_bounds = array<i64: 1>, scalar_prefetch = 0 : i64, scratch_operands = 0 : i64, tpu.core_type = #tpu.core_type<tc>, window_params = [{transform_indices = @transform_0, window_bounds = array<i64: 16, 32>}, {pipeline_mode = #tpu.pipeline_mode<synchronous>, transform_indices = @transform_1, window_bounds = array<i64: 32, 96>}, {pipeline_mode = #tpu.pipeline_mode<synchronous>, transform_indices = @transform_2, window_bounds = array<i64: 1, 96>}, {pipeline_mode = #tpu.pipeline_mode<synchronous>, transform_indices = @transform_3, window_bounds = array<i64: 96, 32>}, {pipeline_mode = #tpu.pipeline_mode<synchronous>, transform_indices = @transform_4, window_bounds = array<i64: 1, 32>}, {transform_indices = @transform_5, window_bounds = array<i64: 16, 32>}]} {
    %c0 = arith.constant 0 : index
    %c0_0 = arith.constant 0 : index
    %0 = vector.load %arg2[%c0, %c0_0] : memref<32x96xbf16, #tpu.memory_space<vmem>>, vector<32x96xbf16>
    %c0_1 = arith.constant 0 : index
    %c0_2 = arith.constant 0 : index
    %1 = vector.load %arg4[%c0_1, %c0_2] : memref<96x32xbf16, #tpu.memory_space<vmem>>, vector<96x32xbf16>
    %c0_3 = arith.constant 0 : index
    %c0_4 = arith.constant 0 : index
    %2 = vector.load %arg1[%c0_3, %c0_4] : memref<16x32xf32, #tpu.memory_space<vmem>>, vector<16x32xf32>
    %3 = arith.truncf %2 : vector<16x32xf32> to vector<16x32xbf16>
    %cst = arith.constant dense<0.000000e+00> : vector<16x96xf32>
    %4 = tpu.matmul %3, %0, %cst {dimension_numbers = #tpu.dot_dimension_numbers<[1], [0], [0], [1], [0, 0, 1, 1], [], []>} : vector<16x32xbf16>, vector<32x96xbf16>, vector<16x96xf32> -> vector<16x96xf32>
    %c0_5 = arith.constant 0 : index
    %c0_6 = arith.constant 0 : index
    %5 = vector.load %arg3[%c0_5, %c0_6] : memref<1x96xf32, #tpu.memory_space<vmem>>, vector<1x96xf32>
    %6 = vector.broadcast %5 : vector<1x96xf32> to vector<16x96xf32>
    %7 = arith.addf %4, %6 : vector<16x96xf32>
    %cst_7 = arith.constant 0.000000e+00 : f32
    %8 = vector.broadcast %cst_7 : f32 to vector<16x96xf32>
    %9 = arith.subf %8, %7 : vector<16x96xf32>
    %10 = math.exp %9 : vector<16x96xf32>
    %cst_8 = arith.constant 1.000000e+00 : f32
    %11 = vector.broadcast %cst_8 : f32 to vector<16x96xf32>
    %12 = arith.addf %11, %10 : vector<16x96xf32>
    %13 = tpu.reciprocal %12 {approx = true} : vector<16x96xf32> -> vector<16x96xf32>
    %14 = arith.mulf %7, %13 : vector<16x96xf32>
    %15 = arith.truncf %14 : vector<16x96xf32> to vector<16x96xbf16>
    %cst_9 = arith.constant dense<0.000000e+00> : vector<16x32xf32>
    %16 = tpu.matmul %15, %1, %cst_9 {dimension_numbers = #tpu.dot_dimension_numbers<[1], [0], [0], [1], [0, 0, 1, 1], [], []>} : vector<16x96xbf16>, vector<96x32xbf16>, vector<16x32xf32> -> vector<16x32xf32>
    %c0_10 = arith.constant 0 : index
    %c0_11 = arith.constant 0 : index
    %17 = vector.load %arg5[%c0_10, %c0_11] : memref<1x32xf32, #tpu.memory_space<vmem>>, vector<1x32xf32>
    %18 = vector.broadcast %17 : vector<1x32xf32> to vector<16x32xf32>
    %19 = arith.addf %16, %18 : vector<16x32xf32>
    %cst_12 = arith.constant 0.000000e+00 : f32
    %20 = vector.broadcast %cst_12 : f32 to vector<16x32xf32>
    %21 = arith.subf %20, %19 : vector<16x32xf32>
    %22 = math.exp %21 : vector<16x32xf32>
    %cst_13 = arith.constant 1.000000e+00 : f32
    %23 = vector.broadcast %cst_13 : f32 to vector<16x32xf32>
    %24 = arith.addf %23, %22 : vector<16x32xf32>
    %25 = tpu.reciprocal %24 {approx = true} : vector<16x32xf32> -> vector<16x32xf32>
    %26 = arith.mulf %19, %25 : vector<16x32xf32>
    %c0_14 = arith.constant 0 : index
    %c0_15 = arith.constant 0 : index
    %27 = vector.load %arg6[%c0_14, %c0_15] : memref<16x32xf32, #tpu.memory_space<vmem>>, vector<16x32xf32>
    tpu.vector_store %arg6[%c0_14, %c0_15], %26 {strides = array<i32>} : memref<16x32xf32, #tpu.memory_space<vmem>>, vector<16x32xf32>,
    return
  }
  func.func @transform_0(%arg0: i32) -> (i32, i32) {
    %c0_i32 = arith.constant 0 : i32
    %c0_i32_0 = arith.constant 0 : i32
    return %arg0, %c0_i32 : i32, i32
  }
  func.func @transform_1(%arg0: i32) -> (i32, i32) {
    %c0_i32 = arith.constant 0 : i32
    %c0_i32_0 = arith.constant 0 : i32
    %c0_i32_1 = arith.constant 0 : i32
    return %c0_i32, %c0_i32_0 : i32, i32
  }
  func.func @transform_2(%arg0: i32) -> (i32, i32) {
    %c0_i32 = arith.constant 0 : i32
    %c0_i32_0 = arith.constant 0 : i32
    %c0_i32_1 = arith.constant 0 : i32
    return %c0_i32, %c0_i32_0 : i32, i32
  }
  func.func @transform_3(%arg0: i32) -> (i32, i32) {
    %c0_i32 = arith.constant 0 : i32
    %c0_i32_0 = arith.constant 0 : i32
    %c0_i32_1 = arith.constant 0 : i32
    return %c0_i32, %c0_i32_0 : i32, i32
  }
  func.func @transform_4(%arg0: i32) -> (i32, i32) {
    %c0_i32 = arith.constant 0 : i32
    %c0_i32_0 = arith.constant 0 : i32
    %c0_i32_1 = arith.constant 0 : i32
    return %c0_i32, %c0_i32_0 : i32, i32
  }
  func.func @transform_5(%arg0: i32) -> (i32, i32) {
    %c0_i32 = arith.constant 0 : i32
    %c0_i32_0 = arith.constant 0 : i32
    return %arg0, %c0_i32 : i32, i32
  }
}

</mosaic_0001>

<bundles_post_ra>
// kernel: tpu_custom_call.1
= control target key start
LH: loop header
LB: loop body
LE: loop exit
PB: predicated region body
PF: predicated region fallthrough
CT: control target
= control target key end

     0   :  { %s342_s0 = inlined_call_operand.vmem [shape: f32[16,32], index: 0, kind: input, shape index: {}]   ;;  %s343_s1 = inlined_call_operand.vmem [shape: bf16[32,96], index: 1, kind: input, shape index: {}]   ;;  %s344_s2 = inlined_call_operand.vmem [shape: f32[1,96], index: 2, kind: input, shape index: {}]   ;;  %s345_s3 = inlined_call_operand.vmem [shape: bf16[96,32], index: 3, kind: input, shape index: {}]   ;;  %s346_s4 = inlined_call_operand.vmem [shape: f32[1,32], index: 4, kind: input, shape index: {}]   ;;  %s347_s5 = inlined_call_operand.hbm [shape: f32[16,32], index: 5, kind: output, shape index: {}]  }
   0x1   :  { %v213_v0 = vld [vmem:[%s343_s1 + $0x8] sm:$0xff]  ;;  %v212_v1 = vld [vmem:[%s343_s1] sm:$0xff] }
   0x2   :  { %v38_v2 = vld [vmem:[%s342_s0] sm:$0xff]  ;;  %67 = vmatpush.bf16.msra.mxu0 %v213_v0  ;;  %v39_v3 = vld [vmem:[%s342_s0 + $0x8] sm:$0xff] }
   0x3   :  { %10 = vsyncpa [#allocation3], 0  ;;  %v40_v4 = vpack.c.bf16 %v39_v3, %v38_v2  ;;  %vm57_vm0 = vcmask 261120   ;;  %v219_v5 = vld [vmem:[%s345_s3 + $0x28] sm:$0xff]  ;;  %v218_v6 = vld [vmem:[%s345_s3 + $0x20] sm:$0xff]  ;;  %vm128_vm1 = vcmask 785408  }
   0x4   :  { %134 = vmatpush.bf16.msra.mxu1 %v219_v5  ;;  %v217_v7 = vld [vmem:[%s345_s3 + $0x18] sm:$0xff]  ;;  %v216_v8 = vld [vmem:[%s345_s3 + $0x10] sm:$0xff]  ;;  %v215_v9 = vld [vmem:[%s345_s3 + $0x8] sm:$0xff]  ;;  %s166_s16 = sshll.u32 %s347_s5, 4  ;;  %s268_s17 = smov 128   ;;  %s167_s16 = int_to_ptr.hbm [resolvable:$true] %s166_s16 }
   0x5   :  { %v223_v10 = vld [vmem:[%s344_s2] ss:$0 sm:$0xff]  ;;  %s269_s18 = smov 8  }
   0x6   :  { %68 = vmatpush.bf16.msra.mxu0 %v212_v1  ;;  %v214_v11 = vld [vmem:[%s345_s3] sm:$0xff] }
   0x7   :  { %v224_v29 = vld [vmem:[%s346_s4] ss:$0 sm:$0xff]  ;;  %s267_s4 = smov [#allocation2]  }
   0x8   :  { %135 = vmatpush.bf16.msra.mxu1 %v218_v6  ;;  %s164_s13 = sshll.u32 %s267_s4, 4  ;;  %s165_s13 = int_to_ptr.vmem [resolvable:$true] %s164_s13 }
   0x9   :  { %186 = vmatmul.msk.bf16.vlgmr.msra.gmra.mxu0 %vm57_vm0, %v40_v4 }
   0xc   :  { %136 = vmatpush.bf16.msra.mxu1 %v217_v7 }
  0x10   :  { %137 = vmatpush.bf16.msra.mxu1 %v216_v8 }
  0x14   :  { %138 = vmatpush.bf16.msra.mxu1 %v215_v9 }
  0x18   :  { %139 = vmatpush.bf16.msra.mxu1 %v214_v11 }
  0x86   :  { %v70_v12 = vpop.f32.mrf.mxu0 }
  0x87   :  { %v71_v13 = vadd.f32 %v223_v10, %v70_v12 }
  0x89   :  { %v75_v14 = vsub.f32 0.0, %v71_v13 }
  0x8b   :  { %v77_v15 = vmul.f32 1.442695, %v75_v14 }
  0x8d   :  { %225 = vpow2.f32 %v77_v15 }
  0x8e   :  { %v72_v16 = vpop.f32.mrf.mxu0 }
  0x8f   :  { %v73_v17 = vadd.f32 %v223_v10, %v72_v16 }
  0x91   :  { %v76_v18 = vsub.f32 0.0, %v73_v17 }
  0x93   :  { %v79_v19 = vmul.f32 1.442695, %v76_v18  ;;  %v226_v20 = vpop.eup %225 }
  0x94   :  { %v81_v21 = vadd.f32 1.0, %v226_v20 }
  0x95   :  { %227 = vpow2.f32 %v79_v19 }
  0x96   :  { %229 = vrcp.f32 %v81_v21 }
  0x9b   :  { %v228_v22 = vpop.eup %227 }
  0x9c   :  { %v82_v23 = vadd.f32 1.0, %v228_v22  ;;  %v230_v24 = vpop.eup %229 }
  0x9d   :  { %v85_v26 = vmul.f32 %v230_v24, %v71_v13 }
  0x9e   :  { %231 = vrcp.f32 %v82_v23 }
  0xa4   :  { %v232_v25 = vpop.eup %231 }
  0xa5   :  { %v86_v27 = vmul.f32 %v232_v25, %v73_v17 }
  0xa7   :  { %v87_v28 = vpack.c.bf16 %v86_v27, %v85_v26 }
  0xa9   :  { %211 = vmatmul.msk.bf16.vlgmr.msra.gmra.mxu1 %vm128_vm1, %v87_v28 }
 0x126   :  { %v141_v30 = vpop.f32.mrf.mxu1 }
 0x127   :  { %v142_v31 = vadd.f32 %v224_v29, %v141_v30 }
 0x129   :  { %v146_v32 = vsub.f32 0.0, %v142_v31 }
 0x12b   :  { %v148_v33 = vmul.f32 1.442695, %v146_v32 }
 0x12d   :  { %233 = vpow2.f32 %v148_v33 }
 0x12e   :  { %v143_v34 = vpop.f32.mrf.mxu1 }
 0x12f   :  { %v144_v35 = vadd.f32 %v224_v29, %v143_v34 }
 0x131   :  { %v147_v36 = vsub.f32 0.0, %v144_v35 }
 0x133   :  { %v234_v37 = vpop.eup %233  ;;  %v150_v38 = vmul.f32 1.442695, %v147_v36 }
 0x134   :  { %v152_v39 = vadd.f32 1.0, %v234_v37 }
 0x135   :  { %235 = vpow2.f32 %v150_v38 }
 0x136   :  { %237 = vrcp.f32 %v152_v39 }
 0x13b   :  { %v236_v40 = vpop.eup %235 }
 0x13c   :  { %v238_v41 = vpop.eup %237  ;;  %v153_v42 = vadd.f32 1.0, %v236_v40 }
 0x13d   :  { %v156_v43 = vmul.f32 %v238_v41, %v142_v31 }
 0x13e   :  { %239 = vrcp.f32 %v153_v42 }
 0x13f   :  { %158 = vst.msk [vmem:[#allocation2] sm:$0xff] %vm57_vm0, %v156_v43 }
 0x144   :  { %v240_v44 = vpop.eup %239 }
 0x145   :  { %v157_v45 = vmul.f32 %v240_v44, %v144_v35 }
 0x147   :  { %159 = vst.msk [vmem:[#allocation2 + $0x8] sm:$0xff] %vm57_vm0, %v157_v45 }
 0x148   :  { %172 = dma.vmem_to_hbm [thread:$0]  %s165_s13, 256, %s167_s16, [#allocation3], %s268_s17, %s268_s17, %s269_s18  }
 0x149   :  { %265 = dma.done.wait [#allocation3], 256  }
 0x14a   :  { %266 = vsyncadd [#allocation3], 4294967040 }
 0x14b   :  { %177 = vsyncpa [#allocation3], 1 }

</bundles_post_ra>
